<compile_context>
chip_gen: v6e
topology: v6e:2x2x1
jax: 0.10.0
libtpu: 0.0.40
codegen_flags: <defaults>
</compile_context>

<pallas_src>
import functools

import jax
import jax.numpy as jnp
from jax.experimental import pallas as pl
from jax.experimental.pallas import tpu as pltpu


_VMEM_LIMIT = 32 * 1024 * 1024   # actual footprint is well under 10 MiB


def _round_up(x, m):
    return ((x + m - 1) // m) * m


def _pick_tile(n, candidates, prefer_multi=False):
    """Largest candidate dividing n; optionally prefer >= 2 tiles (v7x 2-TC)."""
    divs = [t for t in candidates if n % t == 0]
    if prefer_multi:
        multi = [t for t in divs if n // t >= 2]
        if multi:
            return multi[0]
    if divs:
        return divs[0]
    return n


def _gat_attn_kernel(adj_ref, a_dst_ref, a_src_ref, x_ref, w_ref, bias_ref,
                     out_ref, m_sc, l_sc, acc_sc, *, tn):
    """Fused GATConv layer: online masked softmax + aggregation + W + bias + ELU.

    grid = (row tiles i, source tiles j); j is the reduction axis (last).
    """
    j = pl.program_id(1)

    @pl.when(j == 0)
    def _():
        m_sc[...] = jnp.full(m_sc.shape, -jnp.inf, m_sc.dtype)
        l_sc[...] = jnp.zeros(l_sc.shape, l_sc.dtype)
        acc_sc[...] = jnp.zeros(acc_sc.shape, acc_sc.dtype)

    # Unmasked attention logits; LeakyReLU(0.2) as max(s, 0.2*s).
    s = a_dst_ref[...] + a_src_ref[...]                   # [tm,1]+[1,tn]->[tm,tn]
    s = jnp.maximum(s, 0.2 * s)

    # Online softmax over UNMASKED scores (shift-invariant), multiplicative
    # int8 mask applied after exp: masked entries contribute exactly 0.
    m_prev = m_sc[...]
    m_new = jnp.maximum(m_prev, jnp.max(s, axis=-1, keepdims=True))
    alpha = jnp.exp(m_prev - m_new)
    p = jnp.exp(s - m_new) * adj_ref[...].astype(jnp.float32)   # [tm, tn] f32
    l_sc[...] = alpha * l_sc[...] + jnp.sum(p, axis=-1, keepdims=True)

    # Aggregate raw (un-projected) source features; W is applied once at the end.
    start = pl.multiple_of(j * tn, tn)
    x_tile = x_ref[pl.ds(start, tn), :]                   # [tn, d] from resident x
    acc_sc[...] = alpha * acc_sc[...] + jnp.dot(
        p, x_tile, preferred_element_type=jnp.float32)    # [tm, d] f32
    m_sc[...] = m_new

    @pl.when(j == pl.num_programs(1) - 1)
    def _():
        agg = acc_sc[...] * pl.reciprocal(l_sc[...], approx=False)
        out = jnp.dot(agg, w_ref[...],
                      preferred_element_type=jnp.float32) + bias_ref[...]
        # ELU(alpha=1)
        out_ref[...] = jnp.where(out > 0, out, jnp.exp(out) - 1.0)


def gat_conv_elu(x_pad, adj_i8, w, att_src, att_dst, bias, tm, tn):
    """One GATConv(heads=1) + ELU layer (eval mode), single pallas_call."""
    n_pad, d = x_pad.shape

    # Tiny XLA matvecs (fused by XLA) replace the old projection pallas pass:
    #   a_dst[i] = h_i . att_dst = x_i . (W @ att_dst^T), same for a_src.
    a_dst_col = x_pad @ (w @ att_dst.T)                   # [n_pad, 1] f32
    a_src_row = (x_pad @ (w @ att_src.T)).reshape(1, n_pad)   # [1, n_pad] f32

    grid = (n_pad // tm, n_pad // tn)

    out = pl.pallas_call(
        functools.partial(_gat_attn_kernel, tn=tn),
        out_shape=jax.ShapeDtypeStruct((n_pad, d), jnp.float32),
        grid_spec=pltpu.PrefetchScalarGridSpec(
            num_scalar_prefetch=0,
            grid=grid,
            in_specs=[
                pl.BlockSpec((tm, tn), lambda i, j: (i, j)),      # adj (int8)
                pl.BlockSpec((tm, 1), lambda i, j: (i, 0)),       # a_dst column
                pl.BlockSpec((1, tn), lambda i, j: (0, j)),       # a_src row
                pl.BlockSpec((n_pad, d), lambda i, j: (0, 0)),    # x (resident)
                pl.BlockSpec((d, d), lambda i, j: (0, 0)),        # W (resident)
                pl.BlockSpec((1, d), lambda i, j: (0, 0)),        # bias
            ],
            out_specs=pl.BlockSpec((tm, d), lambda i, j: (i, 0)),
            scratch_shapes=[pltpu.VMEM((tm, 1), jnp.float32),     # running max
                            pltpu.VMEM((tm, 1), jnp.float32),     # running denom
                            pltpu.VMEM((tm, d), jnp.float32)]),   # running p @ x
        compiler_params=pltpu.CompilerParams(
            dimension_semantics=("parallel", "arbitrary"),
            vmem_limit_bytes=_VMEM_LIMIT),
        cost_estimate=pl.CostEstimate(
            flops=2 * n_pad * n_pad * d + 2 * n_pad * d * d,
            transcendentals=n_pad * n_pad + n_pad * d,
            bytes_accessed=n_pad * n_pad + 8 * n_pad * d + 8 * n_pad),
    )(adj_i8, a_dst_col, a_src_row, x_pad, w, bias)
    return out


def build_dense_adj(edge_index, num_nodes_padded):
    """Dense int8 adjacency with self-loops; adj[i, j] = 1 iff edge j -> i."""
    src = edge_index[0]
    dst = edge_index[1]
    adj = jnp.zeros((num_nodes_padded, num_nodes_padded), jnp.int8)
    adj = adj.at[dst, src].set(1)
    idx = jnp.arange(num_nodes_padded)
    adj = adj.at[idx, idx].set(1)   # add_self_loops=True (padded rows harmless)
    return adj


def gat_pyg_forward(x, edge_index, params):
    """Reproduces GAT_pyg.forward in eval mode. Returns (xbar, z)."""
    n, d = x.shape
    n_pad = max(_round_up(n, 128), 128)
    # tm multiple of 32 (int8 min sublane tile) with >= 2 row tiles when possible
    tm = _pick_tile(n_pad, (256, 128, 64, 32), prefer_multi=True)
    tn = _pick_tile(n_pad, (2048, 1024, 512, 256, 128))

    x_pad = jnp.pad(x, ((0, n_pad - n), (0, 0)))
    adj = build_dense_adj(edge_index, n_pad)

    # layer 1: z = dropout(elu(gat1(x)))  -> dropout is identity in eval
    z_pad = gat_conv_elu(x_pad, adj, params["w1"], params["att_src1"],
                         params["att_dst1"], params["bias1"], tm, tn)
    # layer 2: xbar = dropout(elu(gat2(z)))
    xbar_pad = gat_conv_elu(z_pad, adj, params["w2"], params["att_src2"],
                            params["att_dst2"], params["bias2"], tm, tn)
    return xbar_pad[:n], z_pad[:n]


# ---------- pure-JAX f32 reference (correctness check only) ----------
def _gat_layer_ref(x, adj, w, att_src, att_dst, bias):
    h = x @ w
    a_src = jnp.sum(h * att_src, axis=-1, keepdims=True)
    a_dst = jnp.sum(h * att_dst, axis=-1, keepdims=True)
    scores = a_dst + a_src.T
    scores = jnp.where(scores > 0, scores, 0.2 * scores)
    scores = jnp.where(adj > 0, scores, -jnp.inf)
    attn = jax.nn.softmax(scores, axis=-1)
    out = attn @ h + bias
    return jnp.where(out > 0, out, jnp.exp(out) - 1.0)


def gat_pyg_ref(x, edge_index, params):
    n = x.shape[0]
    adj = build_dense_adj(edge_index, n).astype(jnp.float32)
    z = _gat_layer_ref(x, adj, params["w1"], params["att_src1"],
                       params["att_dst1"], params["bias1"])
    xbar = _gat_layer_ref(z, adj, params["w2"], params["att_src2"],
                          params["att_dst2"], params["bias2"])
    return xbar, z


def init_params(key, latent_dim):
    ks = jax.random.split(key, 8)
    scale = 1.0 / jnp.sqrt(latent_dim)
    def mk(k, shape):
        return (jax.random.uniform(k, shape, jnp.float32) * 2.0 - 1.0) * scale
    return {
        "w1":       mk(ks[0], (latent_dim, latent_dim)),
        "att_src1": mk(ks[1], (1, latent_dim)),
        "att_dst1": mk(ks[2], (1, latent_dim)),
        "bias1":    jnp.zeros((1, latent_dim), jnp.float32),
        "w2":       mk(ks[3], (latent_dim, latent_dim)),
        "att_src2": mk(ks[4], (1, latent_dim)),
        "att_dst2": mk(ks[5], (1, latent_dim)),
        "bias2":    jnp.zeros((1, latent_dim), jnp.float32),
    }


if __name__ == "__main__":
    key = jax.random.PRNGKey(0)
    latent_dim = 32
    num_nodes = 8

    k_x, k_p = jax.random.split(key)
    x = jax.random.normal(k_x, (num_nodes, latent_dim), jnp.float32)

    # Deterministic bidirectional ring graph, PyG edge_index layout [2, E].
    src = jnp.arange(num_nodes, dtype=jnp.int32)
    dst = (src + 1) % num_nodes
    edge_index = jnp.stack(
        [jnp.concatenate([src, dst]), jnp.concatenate([dst, src])], axis=0)

    params = init_params(k_p, latent_dim)

    xbar, z = jax.jit(gat_pyg_forward)(x, edge_index, params)
    jax.block_until_ready((xbar, z))

    assert xbar.shape == (num_nodes, latent_dim) and xbar.dtype == jnp.float32
    assert z.shape == (num_nodes, latent_dim) and z.dtype == jnp.float32

    # f32 throughout in the kernel; tolerance covers MXU default-precision and
    # exp implementation differences.
    xbar_ref, z_ref = gat_pyg_ref(x, edge_index, params)
    assert bool(jnp.allclose(z, z_ref, atol=5e-2, rtol=5e-2)), "z mismatch"
    assert bool(jnp.allclose(xbar, xbar_ref, atol=5e-2, rtol=5e-2)), "xbar mismatch"

    print("KERNEL_OK")
</pallas_src>

<mosaic_0001>
module attributes {stable_mosaic.version = 11 : i64} {
  func.func @_gat_attn_kernel(%arg0: i32, %arg1: i32, %arg2: memref<64x128xi8, #tpu.memory_space<vmem>>, %arg3: memref<64x1xf32, #tpu.memory_space<vmem>>, %arg4: memref<1x128xf32, #tpu.memory_space<vmem>>, %arg5: memref<128x32xf32, #tpu.memory_space<vmem>>, %arg6: memref<32x32xf32, #tpu.memory_space<vmem>>, %arg7: memref<1x32xf32, #tpu.memory_space<vmem>>, %arg8: memref<64x32xf32, #tpu.memory_space<vmem>>, %arg9: memref<64x1xf32, #tpu.memory_space<vmem>>, %arg10: memref<64x1xf32, #tpu.memory_space<vmem>>, %arg11: memref<64x32xf32, #tpu.memory_space<vmem>>) attributes {dimension_semantics = [#tpu.dimension_semantics<parallel>, #tpu.dimension_semantics<arbitrary>], iteration_bounds = array<i64: 2, 1>, scalar_prefetch = 0 : i64, scratch_operands = 3 : i64, tpu.core_type = #tpu.core_type<tc>, window_params = [{transform_indices = @transform_0, window_bounds = array<i64: 64, 128>}, {transform_indices = @transform_1, window_bounds = array<i64: 64, 1>}, {transform_indices = @transform_2, window_bounds = array<i64: 1, 128>}, {pipeline_mode = #tpu.pipeline_mode<synchronous>, transform_indices = @transform_3, window_bounds = array<i64: 128, 32>}, {pipeline_mode = #tpu.pipeline_mode<synchronous>, transform_indices = @transform_4, window_bounds = array<i64: 32, 32>}, {pipeline_mode = #tpu.pipeline_mode<synchronous>, transform_indices = @transform_5, window_bounds = array<i64: 1, 32>}, {transform_indices = @transform_6, window_bounds = array<i64: 64, 32>}]} {
    %c0_i32 = arith.constant 0 : i32
    %0 = arith.cmpi eq, %arg1, %c0_i32 : i32
    %1 = arith.extui %0 : i1 to i32
    %c0_i32_0 = arith.constant 0 : i32
    %2 = arith.cmpi ne, %1, %c0_i32_0 : i32
    scf.if %2 {
      %cst_24 = arith.constant 0xFF800000 : f32
      %43 = vector.broadcast %cst_24 : f32 to vector<64x1xf32>
      %c0_25 = arith.constant 0 : index
      %c0_26 = arith.constant 0 : index
      %44 = vector.load %arg9[%c0_25, %c0_26] : memref<64x1xf32, #tpu.memory_space<vmem>>, vector<64x1xf32>
      tpu.vector_store %arg9[%c0_25, %c0_26], %43 {strides = array<i32>} : memref<64x1xf32, #tpu.memory_space<vmem>>, vector<64x1xf32>,
      %cst_27 = arith.constant 0.000000e+00 : f32
      %45 = vector.broadcast %cst_27 : f32 to vector<64x1xf32>
      %c0_28 = arith.constant 0 : index
      %c0_29 = arith.constant 0 : index
      %46 = vector.load %arg10[%c0_28, %c0_29] : memref<64x1xf32, #tpu.memory_space<vmem>>, vector<64x1xf32>
      tpu.vector_store %arg10[%c0_28, %c0_29], %45 {strides = array<i32>} : memref<64x1xf32, #tpu.memory_space<vmem>>, vector<64x1xf32>,
      %cst_30 = arith.constant 0.000000e+00 : f32
      %47 = vector.broadcast %cst_30 : f32 to vector<64x32xf32>
      %c0_31 = arith.constant 0 : index
      %c0_32 = arith.constant 0 : index
      %48 = vector.load %arg11[%c0_31, %c0_32] : memref<64x32xf32, #tpu.memory_space<vmem>>, vector<64x32xf32>
      tpu.vector_store %arg11[%c0_31, %c0_32], %47 {strides = array<i32>} : memref<64x32xf32, #tpu.memory_space<vmem>>, vector<64x32xf32>,
    } else {
    }
    %c0 = arith.constant 0 : index
    %c0_1 = arith.constant 0 : index
    %3 = vector.load %arg3[%c0, %c0_1] : memref<64x1xf32, #tpu.memory_space<vmem>>, vector<64x1xf32>
    %c0_2 = arith.constant 0 : index
    %c0_3 = arith.constant 0 : index
    %4 = vector.load %arg4[%c0_2, %c0_3] : memref<1x128xf32, #tpu.memory_space<vmem>>, vector<1x128xf32>
    %5 = vector.broadcast %3 : vector<64x1xf32> to vector<64x128xf32>
    %6 = vector.broadcast %4 : vector<1x128xf32> to vector<64x128xf32>
    %7 = arith.addf %5, %6 : vector<64x128xf32>
    %cst = arith.constant 2.000000e-01 : f32
    %8 = vector.broadcast %cst : f32 to vector<64x128xf32>
    %9 = arith.mulf %8, %7 : vector<64x128xf32>
    %10 = arith.maximumf %7, %9 : vector<64x128xf32>
    %c0_4 = arith.constant 0 : index
    %c0_5 = arith.constant 0 : index
    %11 = vector.load %arg9[%c0_4, %c0_5] : memref<64x1xf32, #tpu.memory_space<vmem>>, vector<64x1xf32>
    %cst_6 = arith.constant dense<0xFF800000> : vector<64xf32>
    %12 = vector.multi_reduction <maximumf>, %10, %cst_6 [1] : vector<64x128xf32> to vector<64xf32>
    %13 = vector.shape_cast %12 : vector<64xf32> to vector<64x1xf32>
    %14 = arith.maximumf %11, %13 : vector<64x1xf32>
    %15 = arith.subf %11, %14 : vector<64x1xf32>
    %16 = math.exp %15 : vector<64x1xf32>
    %17 = vector.broadcast %14 : vector<64x1xf32> to vector<64x128xf32>
    %18 = arith.subf %10, %17 : vector<64x128xf32>
    %19 = math.exp %18 : vector<64x128xf32>
    %c0_7 = arith.constant 0 : index
    %c0_8 = arith.constant 0 : index
    %20 = vector.load %arg2[%c0_7, %c0_8] : memref<64x128xi8, #tpu.memory_space<vmem>>, vector<64x128xi8>
    %21 = arith.sitofp %20 : vector<64x128xi8> to vector<64x128xf32>
    %22 = arith.mulf %19, %21 : vector<64x128xf32>
    %c0_9 = arith.constant 0 : index
    %c0_10 = arith.constant 0 : index
    %23 = vector.load %arg10[%c0_9, %c0_10] : memref<64x1xf32, #tpu.memory_space<vmem>>, vector<64x1xf32>
    %24 = arith.mulf %16, %23 : vector<64x1xf32>
    %cst_11 = arith.constant dense<0.000000e+00> : vector<64xf32>
    %25 = vector.multi_reduction <add>, %22, %cst_11 [1] : vector<64x128xf32> to vector<64xf32>
    %26 = vector.shape_cast %25 : vector<64xf32> to vector<64x1xf32>
    %27 = arith.addf %24, %26 : vector<64x1xf32>
    %c0_12 = arith.constant 0 : index
    %c0_13 = arith.constant 0 : index
    %28 = vector.load %arg10[%c0_12, %c0_13] : memref<64x1xf32, #tpu.memory_space<vmem>>, vector<64x1xf32>
    tpu.vector_store %arg10[%c0_12, %c0_13], %27 {strides = array<i32>} : memref<64x1xf32, #tpu.memory_space<vmem>>, vector<64x1xf32>,
    %c128_i32 = arith.constant 128 : i32
    %29 = arith.muli %arg1, %c128_i32 : i32
    %30 = tpu.assume_multiple %29, 128 : i32
    %31 = arith.index_cast %30 : i32 to index
    %c0_14 = arith.constant 0 : index
    %32 = vector.load %arg5[%31, %c0_14] : memref<128x32xf32, #tpu.memory_space<vmem>>, vector<128x32xf32>
    %c0_15 = arith.constant 0 : index
    %c0_16 = arith.constant 0 : index
    %33 = vector.load %arg11[%c0_15, %c0_16] : memref<64x32xf32, #tpu.memory_space<vmem>>, vector<64x32xf32>
    %34 = vector.broadcast %16 : vector<64x1xf32> to vector<64x32xf32>
    %35 = arith.mulf %34, %33 : vector<64x32xf32>
    %cst_17 = arith.constant dense<0.000000e+00> : vector<64x32xf32>
    %36 = tpu.matmul %22, %32, %cst_17 {dimension_numbers = #tpu.dot_dimension_numbers<[1], [0], [0], [1], [0, 0, 1, 1], [], []>} : vector<64x128xf32>, vector<128x32xf32>, vector<64x32xf32> -> vector<64x32xf32>
    %37 = arith.addf %35, %36 : vector<64x32xf32>
    %c0_18 = arith.constant 0 : index
    %c0_19 = arith.constant 0 : index
    %38 = vector.load %arg11[%c0_18, %c0_19] : memref<64x32xf32, #tpu.memory_space<vmem>>, vector<64x32xf32>
    tpu.vector_store %arg11[%c0_18, %c0_19], %37 {strides = array<i32>} : memref<64x32xf32, #tpu.memory_space<vmem>>, vector<64x32xf32>,
    %c0_20 = arith.constant 0 : index
    %c0_21 = arith.constant 0 : index
    %39 = vector.load %arg9[%c0_20, %c0_21] : memref<64x1xf32, #tpu.memory_space<vmem>>, vector<64x1xf32>
    tpu.vector_store %arg9[%c0_20, %c0_21], %14 {strides = array<i32>} : memref<64x1xf32, #tpu.memory_space<vmem>>, vector<64x1xf32>,
    %c0_i32_22 = arith.constant 0 : i32
    %40 = arith.cmpi eq, %arg1, %c0_i32_22 : i32
    %41 = arith.extui %40 : i1 to i32
    %c0_i32_23 = arith.constant 0 : i32
    %42 = arith.cmpi ne, %41, %c0_i32_23 : i32
    scf.if %42 {
      %c0_24 = arith.constant 0 : index
      %c0_25 = arith.constant 0 : index
      %43 = vector.load %arg11[%c0_24, %c0_25] : memref<64x32xf32, #tpu.memory_space<vmem>>, vector<64x32xf32>
      %c0_26 = arith.constant 0 : index
      %c0_27 = arith.constant 0 : index
      %44 = vector.load %arg10[%c0_26, %c0_27] : memref<64x1xf32, #tpu.memory_space<vmem>>, vector<64x1xf32>
      %45 = tpu.reciprocal %44 : vector<64x1xf32> -> vector<64x1xf32>
      %46 = vector.broadcast %45 : vector<64x1xf32> to vector<64x32xf32>
      %47 = arith.mulf %43, %46 : vector<64x32xf32>
      %c0_28 = arith.constant 0 : index
      %c0_29 = arith.constant 0 : index
      %48 = vector.load %arg6[%c0_28, %c0_29] : memref<32x32xf32, #tpu.memory_space<vmem>>, vector<32x32xf32>
      %cst_30 = arith.constant dense<0.000000e+00> : vector<64x32xf32>
      %49 = tpu.matmul %47, %48, %cst_30 {dimension_numbers = #tpu.dot_dimension_numbers<[1], [0], [0], [1], [0, 0, 1, 1], [], []>} : vector<64x32xf32>, vector<32x32xf32>, vector<64x32xf32> -> vector<64x32xf32>
      %c0_31 = arith.constant 0 : index
      %c0_32 = arith.constant 0 : index
      %50 = vector.load %arg7[%c0_31, %c0_32] : memref<1x32xf32, #tpu.memory_space<vmem>>, vector<1x32xf32>
      %51 = vector.broadcast %50 : vector<1x32xf32> to vector<64x32xf32>
      %52 = arith.addf %49, %51 : vector<64x32xf32>
      %cst_33 = arith.constant 0.000000e+00 : f32
      %53 = vector.broadcast %cst_33 : f32 to vector<64x32xf32>
      %54 = arith.cmpf ogt, %52, %53 : vector<64x32xf32>
      %55 = math.exp %52 : vector<64x32xf32>
      %cst_34 = arith.constant 1.000000e+00 : f32
      %56 = vector.broadcast %cst_34 : f32 to vector<64x32xf32>
      %57 = arith.subf %55, %56 : vector<64x32xf32>
      %58 = arith.select %54, %52, %57 : vector<64x32xi1>, vector<64x32xf32>
      %c0_35 = arith.constant 0 : index
      %c0_36 = arith.constant 0 : index
      %59 = vector.load %arg8[%c0_35, %c0_36] : memref<64x32xf32, #tpu.memory_space<vmem>>, vector<64x32xf32>
      tpu.vector_store %arg8[%c0_35, %c0_36], %58 {strides = array<i32>} : memref<64x32xf32, #tpu.memory_space<vmem>>, vector<64x32xf32>,
    } else {
    }
    return
  }
  func.func @transform_0(%arg0: i32, %arg1: i32) -> (i32, i32) {
    %c0_i32 = arith.constant 0 : i32
    return %arg0, %arg1 : i32, i32
  }
  func.func @transform_1(%arg0: i32, %arg1: i32) -> (i32, i32) {
    %c0_i32 = arith.constant 0 : i32
    %c0_i32_0 = arith.constant 0 : i32
    return %arg0, %c0_i32 : i32, i32
  }
  func.func @transform_2(%arg0: i32, %arg1: i32) -> (i32, i32) {
    %c0_i32 = arith.constant 0 : i32
    %c0_i32_0 = arith.constant 0 : i32
    return %c0_i32, %arg1 : i32, i32
  }
  func.func @transform_3(%arg0: i32, %arg1: i32) -> (i32, i32) {
    %c0_i32 = arith.constant 0 : i32
    %c0_i32_0 = arith.constant 0 : i32
    %c0_i32_1 = arith.constant 0 : i32
    return %c0_i32, %c0_i32_0 : i32, i32
  }
  func.func @transform_4(%arg0: i32, %arg1: i32) -> (i32, i32) {
    %c0_i32 = arith.constant 0 : i32
    %c0_i32_0 = arith.constant 0 : i32
    %c0_i32_1 = arith.constant 0 : i32
    return %c0_i32, %c0_i32_0 : i32, i32
  }
  func.func @transform_5(%arg0: i32, %arg1: i32) -> (i32, i32) {
    %c0_i32 = arith.constant 0 : i32
    %c0_i32_0 = arith.constant 0 : i32
    %c0_i32_1 = arith.constant 0 : i32
    return %c0_i32, %c0_i32_0 : i32, i32
  }
  func.func @transform_6(%arg0: i32, %arg1: i32) -> (i32, i32) {
    %c0_i32 = arith.constant 0 : i32
    %c0_i32_0 = arith.constant 0 : i32
    return %arg0, %c0_i32 : i32, i32
  }
}

</mosaic_0001>

<bundles_post_ra>
// kernel: gat_pyg_forward.2
= control target key start
LH: loop header
LB: loop body
LE: loop exit
PB: predicated region body
PF: predicated region fallthrough
CT: control target
= control target key end

     0   :  { %s1491_s21 = smov 0   ;;  %s1493_s22 = smov 0   ;;  %s1819_s0 = inlined_call_operand.vmem [shape: s8[128,128], index: 0, kind: input, shape index: {}]   ;;  %s1820_s1 = inlined_call_operand.vmem [shape: f32[128,1], index: 1, kind: input, shape index: {}]   ;;  %s1821_s2 = inlined_call_operand.vmem [shape: f32[1,128], index: 2, kind: input, shape index: {}]   ;;  %s1822_s3 = inlined_call_operand.vmem [shape: f32[128,32], index: 3, kind: input, shape index: {}]   ;;  %s1823_s4 = inlined_call_operand.vmem [shape: f32[32,32], index: 4, kind: input, shape index: {}]   ;;  %s1824_s5 = inlined_call_operand.vmem [shape: f32[1,32], index: 5, kind: input, shape index: {}]   ;;  %s1825_s6 = inlined_call_operand.vmem [shape: f32[128,32], index: 6, kind: output, shape index: {}]  }
   0x1   :  { %s1495_s23 = smov 0  }
   0x2 LB: > { %s28_s24 = sadd.s32 1, %s1447_s22  ;;  %p1190_p0 = scmp.ge.s32.totalorder %s1451_s23, 1  ;;  %s1451_s23 = sphi %s1495_s23, %s16_s23   ;;  %s1447_s22 = sphi %s1493_s22, %s1827_s22   ;;  %s1443_s21 = sphi %s1491_s21, %s1826_s21  }
   0x3   : > { %p30_p1 = scmp.ge.s32.totalorder %s28_s24, 2  ;;  %p249_p2 = scmp.lt.s32.totalorder %s1451_s23, 3 }
   0x5   : > { %s1829_s24 = smov (%p30_p1, %s28_s24), 0  ;;  %p250_p3 = pnand %p1190_p0, %p249_p2 }
   0x6   : > { %s1191_s25 = sshll.u32 (!%p250_p3), %s1443_s21, 3 }
   0x7   : > { %253 = sbr.rel (%p250_p3) target bundleno = 952 (0x3b8), region = 44  ;;  %p291_p4 = scmp.lt.s32.totalorder (!%p250_p3), %s1191_s25, 15 }
   0xc   : > { %v1453_v0 = vmov 0   ;;  %s1831_s25 = smov (!%p291_p4, %s1191_s25), 15  ;;  %vm318_vm0 = vcmask 7168   ;;  %v1454_v9 = vmov -inf   ;;  %v1197_v10 = vld [vmem:[%s1821_s2] ss:$0 sm:$0xff] }
   0xd   : > { %1364 = vset.pattern.permute.xlu1 %v1453_v0  ;;  %1363 = vset.pattern.permute.xlu0 %v1453_v0  ;;  %s1194_s26 = sshll.u32 %s1831_s25, 3  ;;  %319 = vst.msk [vmem:[#allocation2] sm:$0xff] %vm318_vm0, %v1454_v9  ;;  %320 = vst.msk [vmem:[#allocation2 + $0x8] sm:$0xff] %vm318_vm0, %v1454_v9  ;;  %v1455_v43 = vmov 0.0   ;;  %v641_v44 = vld [vmem:[%s1822_s3 + $0x78] sm:$0xff]  ;;  %v640_v45 = vld [vmem:[%s1822_s3 + $0x70] sm:$0xff] }
   0xe   : > { %s303_s29 = scalar_lea.vmem %s1820_s1, %s1194_s26  ;;  %321 = vst.msk [vmem:[#allocation2 + $0x10] sm:$0xff] %vm318_vm0, %v1454_v9  ;;  %322 = vst.msk [vmem:[#allocation2 + $0x18] sm:$0xff] %vm318_vm0, %v1454_v9  ;;  %1269 = vmatprep.subr.mxu0 %v641_v44  ;;  %v639_v46 = vld [vmem:[%s1822_s3 + $0x68] sm:$0xff]  ;;  %v638_v47 = vld [vmem:[%s1822_s3 + $0x60] sm:$0xff]  ;;  %s1192_s21 = sshll.u32 %s1831_s25, 1  ;;  %vm335_vm1 = vcmask 261120  }
   0xf   : > { %v346_v1 = vld [vmem:[%s303_s29 + $0x10] sm:$0xff]  ;;  %v344_v2 = vld [vmem:[%s303_s29] sm:$0xff]  ;;  %v347_v3 = vld [vmem:[%s303_s29 + $0x18] sm:$0xff]  ;;  %323 = vst.msk [vmem:[#allocation2 + $0x20] sm:$0xff] %vm318_vm0, %v1454_v9  ;;  %1270 = vmatpush3.msra.mxu0 %v641_v44  ;;  %s1792_s18 = scalar_lea.vmem %s1825_s6, %s1194_s26 }
  0x10   : > { %365 = vperm.xlu1 %1364, %v346_v1   ;;  %355 = vperm.xlu0 %1363, %v344_v2   ;;  %v345_v4 = vld [vmem:[%s303_s29 + $0x8] sm:$0xff]  ;;  %v348_v6 = vld [vmem:[%s303_s29 + $0x20] sm:$0xff]  ;;  %v351_v7 = vld [vmem:[%s303_s29 + $0x38] sm:$0xff]  ;;  %324 = vst.msk [vmem:[#allocation2 + $0x28] sm:$0xff] %vm318_vm0, %v1454_v9 }
  0x11   : > { %v349_v5 = vld [vmem:[%s303_s29 + $0x28] sm:$0xff]  ;;  %v350_v8 = vld [vmem:[%s303_s29 + $0x30] sm:$0xff]  ;;  %325 = vst.msk [vmem:[#allocation2 + $0x30] sm:$0xff] %vm318_vm0, %v1454_v9  ;;  %326 = vst.msk [vmem:[#allocation2 + $0x38] sm:$0xff] %vm318_vm0, %v1454_v9  ;;  %1271 = vmatprep.subr.mxu0 %v640_v45  ;;  %s297_s29 = scalar_lea.vmem %s1819_s0, %s1192_s21 }
  0x12   : > { %327 = vst.msk [vmem:[#allocation3] sm:$0xff] %vm318_vm0, %v1455_v43  ;;  %328 = vst.msk [vmem:[#allocation3 + $0x8] sm:$0xff] %vm318_vm0, %v1455_v43  ;;  %1272 = vmatpush3.msra.mxu0 %v640_v45  ;;  %v637_v49 = vld [vmem:[%s1822_s3 + $0x58] sm:$0xff]  ;;  %v636_v52 = vld [vmem:[%s1822_s3 + $0x50] sm:$0xff] }
  0x13   : > { %329 = vst.msk [vmem:[#allocation3 + $0x10] sm:$0xff] %vm318_vm0, %v1455_v43  ;;  %330 = vst.msk [vmem:[#allocation3 + $0x18] sm:$0xff] %vm318_vm0, %v1455_v43  ;;  %1273 = vmatprep.subr.mxu0 %v639_v46  ;;  %v635_v56 = vld [vmem:[%s1822_s3 + $0x48] sm:$0xff]  ;;  %v634_v61 = vld [vmem:[%s1822_s3 + $0x40] sm:$0xff] }
  0x14   : > { %370 = vperm.xlu1 %1364, %v347_v3   ;;  %360 = vperm.xlu0 %1363, %v345_v4   ;;  %331 = vst.msk [vmem:[#allocation3 + $0x20] sm:$0xff] %vm318_vm0, %v1455_v43  ;;  %332 = vst.msk [vmem:[#allocation3 + $0x28] sm:$0xff] %vm318_vm0, %v1455_v43  ;;  %v1580_v48 = vld [vmem:[#allocation2] sm:$0xff]  ;;  %v1591_v53 = vld [vmem:[#allocation2 + $0x8] sm:$0xff] }
  0x15   : > { %333 = vst.msk [vmem:[#allocation3 + $0x30] sm:$0xff] %vm318_vm0, %v1455_v43  ;;  %334 = vst.msk [vmem:[#allocation3 + $0x38] sm:$0xff] %vm318_vm0, %v1455_v43  ;;  %1274 = vmatpush3.msra.mxu0 %v639_v46  ;;  %v1593_v54 = vld [vmem:[#allocation2 + $0x10] sm:$0xff]  ;;  %v1614_v63 = vld [vmem:[#allocation2 + $0x18] sm:$0xff] }
  0x16   : > { %1275 = vmatprep.subr.mxu0 %v638_v47  ;;  %v1612_v62 = vld [vmem:[#allocation2 + $0x20] sm:$0xff]  ;;  %v633_v2 = vld [vmem:[%s1822_s3 + $0x38] sm:$0xff]  ;;  %336 = vst.msk [vmem:[#allocation4] sm:$0xff] %vm335_vm1, %v1455_v43  ;;  %337 = vst.msk [vmem:[#allocation4 + $0x8] sm:$0xff] %vm335_vm1, %v1455_v43 }
  0x17   : > { %1276 = vmatpush3.msra.mxu0 %v638_v47  ;;  %v1640_v9 = vld [vmem:[#allocation2 + $0x28] sm:$0xff]  ;;  %338 = vst.msk [vmem:[#allocation4 + $0x10] sm:$0xff] %vm335_vm1, %v1455_v43  ;;  %339 = vst.msk [vmem:[#allocation4 + $0x18] sm:$0xff] %vm335_vm1, %v1455_v43 }
  0x18   : > { %380 = vperm.xlu1 %1364, %v349_v5   ;;  %375 = vperm.xlu0 %1363, %v348_v6   ;;  %340 = vst.msk [vmem:[#allocation4 + $0x20] sm:$0xff] %vm335_vm1, %v1455_v43  ;;  %341 = vst.msk [vmem:[#allocation4 + $0x28] sm:$0xff] %vm335_vm1, %v1455_v43 }
  0x19   : > { %1277 = vmatprep.subr.mxu0 %v637_v49  ;;  %342 = vst.msk [vmem:[#allocation4 + $0x30] sm:$0xff] %vm335_vm1, %v1455_v43  ;;  %343 = vst.msk [vmem:[#allocation4 + $0x38] sm:$0xff] %vm335_vm1, %v1455_v43 }
  0x1a   : > { %1278 = vmatpush3.msra.mxu0 %v637_v49  ;;  %v1218_v49 = vld [vmem:[%s297_s29] sm:$0xff]  }
  0x1b   : > { %1279 = vmatprep.subr.mxu0 %v636_v52 }
  0x1c   : > { %390 = vperm.xlu1 %1364, %v351_v7   ;;  %385 = vperm.xlu0 %1363, %v350_v8   ;;  %v632_v7 = vld [vmem:[%s1822_s3 + $0x30] sm:$0xff] }
  0x1d   : > { %1280 = vmatpush3.msra.mxu0 %v636_v52  ;;  %v1638_v8 = vld [vmem:[#allocation2 + $0x30] sm:$0xff] }
  0x1e   : > { %1281 = vmatprep.subr.mxu0 %v635_v56 }
  0x1f   : > { %1282 = vmatpush3.msra.mxu0 %v635_v56 }
  0x20   : > { %1283 = vmatprep.subr.mxu0 %v634_v61 }
  0x21   : > { %1284 = vmatpush3.msra.mxu0 %v634_v61 }
  0x22   : > { %1285 = vmatprep.subr.mxu0 %v633_v2 }
  0x23   : > { %1286 = vmatpush3.msra.mxu0 %v633_v2 }
  0x24   : > { %1287 = vmatprep.subr.mxu0 %v632_v7 }
  0x25   : > { %1288 = vmatpush3.msra.mxu0 %v632_v7  ;;  %v1223_v7 = vunpack.c.2.s8 %v1218_v49 }
  0x8b   : > { %v366_v11 = vpop.permute.xlu1 %365  ;;  %v356_v12 = vpop.permute.xlu0 %355 }
  0x8c   : > { %v401_v13 = vadd.f32 %v1197_v10, %v366_v11  ;;  %v399_v14 = vadd.f32 %v1197_v10, %v356_v12  ;;  %v631_v12 = vld [vmem:[%s1822_s3 + $0x28] sm:$0xff] }
  0x8d   : > { %1289 = vmatprep.subr.mxu0 %v631_v12 }
  0x8e   : > { %v407_v15 = vmul.f32 0.2, %v399_v14  ;;  %v409_v18 = vmul.f32 0.2, %v401_v13  ;;  %1290 = vmatpush3.msra.mxu0 %v631_v12 }
  0x8f   : > { %v371_v16 = vpop.permute.xlu1 %370  ;;  %v361_v17 = vpop.permute.xlu0 %360 }
  0x90   : > { %v402_v19 = vadd.f32 %v1197_v10, %v371_v16  ;;  %v400_v20 = vadd.f32 %v1197_v10, %v361_v17  ;;  %v1528_v21 = vmax.f32 %v399_v14, %v407_v15  ;;  %v1531_v28 = vmax.f32 %v401_v13, %v409_v18  ;;  %v1661_v17 = vld [vmem:[#allocation2 + $0x38] sm:$0xff]  ;;  %v630_v18 = vld [vmem:[%s1822_s3 + $0x20] sm:$0xff] }
  0x91   : > { %1291 = vmatprep.subr.mxu0 %v630_v18 }
  0x92   : > { %v408_v22 = vmul.f32 0.2, %v400_v20  ;;  %431 = vmax.xlane.f32.xlu0 %v1528_v21  ;;  %v410_v23 = vmul.f32 0.2, %v402_v19  ;;  %1292 = vmatpush3.msra.mxu0 %v630_v18 }
  0x93   : > { %v381_v24 = vpop.permute.xlu1 %380  ;;  %v376_v25 = vpop.permute.xlu0 %375 }
  0x94   : > { %v404_v26 = vadd.f32 %v1197_v10, %v381_v24  ;;  %v403_v27 = vadd.f32 %v1197_v10, %v376_v25  ;;  %v1533_v29 = vmax.f32 %v400_v20, %v408_v22  ;;  %v1537_v33 = vmax.f32 %v402_v19, %v410_v23  ;;  %v629_v23 = vld [vmem:[%s1822_s3 + $0x18] sm:$0xff]  ;;  %v628_v25 = vld [vmem:[%s1822_s3 + $0x10] sm:$0xff] }
  0x95   : > { %1293 = vmatprep.subr.mxu0 %v629_v23 }
  0x96   : > { %v411_v30 = vmul.f32 0.2, %v403_v27  ;;  %435 = vmax.xlane.f32.xlu0 %v1531_v28  ;;  %433 = vmax.xlane.f32.xlu1 %v1533_v29  ;;  %v412_v34 = vmul.f32 0.2, %v404_v26 }
  0x97   : > { %v391_v31 = vpop.permute.xlu1 %390  ;;  %v386_v32 = vpop.permute.xlu0 %385  ;;  %1294 = vmatpush3.msra.mxu0 %v629_v23  ;;  %v561_v23 = vcvt.s32.f32 %v1223_v7 }
  0x98   : > { %v406_v35 = vadd.f32 %v1197_v10, %v391_v31  ;;  %v405_v36 = vadd.f32 %v1197_v10, %v386_v32  ;;  %v1539_v37 = vmax.f32 %v403_v27, %v411_v30  ;;  %v1543_v40 = vmax.f32 %v404_v26, %v412_v34  ;;  %v627_v27 = vld [vmem:[%s1822_s3 + $0x8] sm:$0xff]  ;;  %1295 = vmatprep.subr.mxu0 %v628_v25  ;;  %v626_v30 = vld [vmem:[%s1822_s3] sm:$0xff] }
  0x99   : > { %1296 = vmatpush3.msra.mxu0 %v628_v25  ;;  %v1224_v25 = vunpack.c.3.s8 %v1218_v49 }
  0x9a   : > { %v413_v38 = vmul.f32 0.2, %v405_v36  ;;  %437 = vmax.xlane.f32.xlu0 %v1537_v33  ;;  %439 = vmax.xlane.f32.xlu1 %v1539_v37  ;;  %v414_v39 = vmul.f32 0.2, %v406_v35 }
  0x9b   : > { %1297 = vmatprep.subr.mxu0 %v627_v27 }
  0x9c   : > { %v1545_v41 = vmax.f32 %v405_v36, %v413_v38  ;;  %v1549_v42 = vmax.f32 %v406_v35, %v414_v39  ;;  %1298 = vmatpush3.msra.mxu0 %v627_v27 }
  0x9d   : > { %1299 = vmatprep.subr.mxu0 %v626_v30 }
  0x9e   : > { %441 = vmax.xlane.f32.xlu0 %v1543_v40  ;;  %443 = vmax.xlane.f32.xlu1 %v1545_v41 }
  0x9f   : > { %1300 = vmatpush3.msra.mxu0 %v626_v30 }
  0xa2   : > { %445 = vmax.xlane.f32.xlu0 %v1549_v42 }
 0x11b   : > { %v432_v50 = vpop.xlane.xlu0 %431 }
 0x11c   : > { %v1586_v51 = vmax.f32 %v1580_v48, %v432_v50 }
 0x11e   : > { %v455_v55 = vsub.f32 %v1580_v48, %v1586_v51  ;;  %820 = vst.msk [vmem:[#allocation2] sm:$0xff] %vm318_vm0, %v1586_v51  ;;  %481 = vperm.xlu1 %1364, %v1586_v51  }
 0x11f   : > { %v434_v57 = vpop.xlane.xlu1 %433  ;;  %v436_v58 = vpop.xlane.xlu0 %435 }
 0x120   : > { %v1604_v59 = vmax.f32 %v1591_v53, %v434_v57  ;;  %v1607_v60 = vmax.f32 %v1593_v54, %v436_v58 }
 0x122   : > { %v456_v0 = vsub.f32 %v1591_v53, %v1604_v59  ;;  %821 = vst.msk [vmem:[#allocation2 + $0x8] sm:$0xff] %vm318_vm0, %v1604_v59  ;;  %v457_v1 = vsub.f32 %v1593_v54, %v1607_v60  ;;  %822 = vst.msk [vmem:[#allocation2 + $0x10] sm:$0xff] %vm318_vm0, %v1607_v60  ;;  %486 = vperm.xlu0 %1363, %v1604_v59   ;;  %491 = vperm.xlu1 %1364, %v1607_v60  }
 0x123   : > { %v440_v3 = vpop.xlane.xlu1 %439  ;;  %v438_v4 = vpop.xlane.xlu0 %437 }
 0x124   : > { %v1630_v5 = vmax.f32 %v1612_v62, %v440_v3  ;;  %v1633_v6 = vmax.f32 %v1614_v63, %v438_v4 }
 0x126   : > { %v459_v10 = vsub.f32 %v1612_v62, %v1630_v5  ;;  %824 = vst.msk [vmem:[#allocation2 + $0x20] sm:$0xff] %vm318_vm0, %v1630_v5  ;;  %v458_v11 = vsub.f32 %v1614_v63, %v1633_v6  ;;  %823 = vst.msk [vmem:[#allocation2 + $0x18] sm:$0xff] %vm318_vm0, %v1633_v6  ;;  %501 = vperm.xlu0 %1363, %v1630_v5   ;;  %496 = vperm.xlu1 %1364, %v1633_v6   ;;  %v906_v6 = vld [vmem:[%s1823_s4 + $0x18] sm:$0xff] }
 0x127   : > { %v444_v13 = vpop.xlane.xlu1 %443  ;;  %v442_v14 = vpop.xlane.xlu0 %441  ;;  %1313 = vmatprep.subr.mxu1 %v906_v6 }
 0x128   : > { %v1656_v15 = vmax.f32 %v1638_v8, %v444_v13  ;;  %v1659_v16 = vmax.f32 %v1640_v9, %v442_v14  ;;  %v1334_v13 = vld [vmem:[%s297_s29 + $0x8] sm:$0xff]   ;;  %v469_v48 = vmul.f32 1.442695, %v458_v11  ;;  %v471_v51 = vmul.f32 1.442695, %v459_v10  ;;  %1314 = vmatpush3.msra.mxu1 %v906_v6  ;;  %v577_v11 = vld [vmem:[#allocation3 + $0x10] sm:$0xff] }
 0x129   : > { %v1227_v27 = vunpack.c.0.s8 %v1334_v13  ;;  %v644_v6 = vld [vmem:[#allocation4 + $0x10] sm:$0xff] }
 0x12a   : > { %v461_v19 = vsub.f32 %v1638_v8, %v1656_v15  ;;  %826 = vst.msk [vmem:[#allocation2 + $0x30] sm:$0xff] %vm318_vm0, %v1656_v15  ;;  %v460_v20 = vsub.f32 %v1640_v9, %v1659_v16  ;;  %825 = vst.msk [vmem:[#allocation2 + $0x28] sm:$0xff] %vm318_vm0, %v1659_v16  ;;  %511 = vperm.xlu0 %1363, %v1656_v15   ;;  %506 = vperm.xlu1 %1364, %v1659_v16   ;;  %v575_v8 = vld [vmem:[#allocation3] sm:$0xff]  ;;  %v576_v16 = vld [vmem:[#allocation3 + $0x8] sm:$0xff] }
 0x12b   : > { %v446_v22 = vpop.xlane.xlu0 %445 }
 0x12c   : > { %v1680_v24 = vmax.f32 %v1661_v17, %v446_v22  ;;  %v473_v53 = vmul.f32 1.442695, %v460_v20  ;;  %v475_v43 = vmul.f32 1.442695, %v461_v19 }
 0x12e   : > { %v462_v26 = vsub.f32 %v1661_v17, %v1680_v24  ;;  %827 = vst.msk [vmem:[#allocation2 + $0x38] sm:$0xff] %vm318_vm0, %v1680_v24  ;;  %516 = vperm.xlu1 %1364, %v1680_v24   ;;  %v578_v24 = vld [vmem:[#allocation3 + $0x18] sm:$0xff] }
 0x199   : > { %v482_v31 = vpop.permute.xlu1 %481 }
 0x19a   : > { %v519_v32 = vsub.f32 %v1528_v21, %v482_v31 }
 0x19c   : > { %v527_v34 = vmul.f32 1.442695, %v519_v32  ;;  %v562_v32 = vcvt.s32.f32 %v1224_v25 }
 0x19d   : > { %v492_v35 = vpop.permute.xlu1 %491  ;;  %v487_v36 = vpop.permute.xlu0 %486 }
 0x19e   : > { %1365 = vpow2.f32 %v527_v34  ;;  %v521_v38 = vsub.f32 %v1531_v28, %v492_v35  ;;  %v520_v39 = vsub.f32 %v1533_v29, %v487_v36  ;;  %v1219_v28 = vunpack.c.0.s8 %v1218_v49 }
 0x19f   : > { %v1228_v34 = vunpack.c.1.s8 %v1334_v13  ;;  %v563_v36 = vcvt.s32.f32 %v1227_v27 }
 0x1a0   : > { %v531_v44 = vmul.f32 1.442695, %v521_v38  ;;  %v529_v45 = vmul.f32 1.442695, %v520_v39  ;;  %v559_v4 = vcvt.s32.f32 %v1219_v28 }
 0x1a1   : > { %v497_v46 = vpop.permute.xlu1 %496  ;;  %v502_v47 = vpop.permute.xlu0 %501 }
 0x1a2   : > { %1367 = vpow2.f32 %v531_v44  ;;  %v522_v21 = vsub.f32 %v1537_v33, %v497_v46  ;;  %v523_v50 = vsub.f32 %v1539_v37, %v502_v47  ;;  %v1220_v33 = vunpack.c.1.s8 %v1218_v49 }
 0x1a3   : > { %1369 = vpow2.f32 %v529_v45  ;;  %v564_v45 = vcvt.s32.f32 %v1228_v34  ;;  %v1232_v46 = vunpack.c.3.s8 %v1334_v13 }
 0x1a4   : > { %v533_v52 = vmul.f32 1.442695, %v522_v21  ;;  %v535_v56 = vmul.f32 1.442695, %v523_v50 }
 0x1a5   : > { %v507_v57 = vpop.permute.xlu1 %506  ;;  %v512_v29 = vpop.permute.xlu0 %511 }
 0x1a6   : > { %1371 = vpow2.f32 %v533_v52  ;;  %v524_v58 = vsub.f32 %v1543_v40, %v507_v57  ;;  %v525_v61 = vsub.f32 %v1545_v41, %v512_v29  ;;  %v560_v40 = vcvt.s32.f32 %v1220_v33 }
 0x1a7   : > { %1373 = vpow2.f32 %v535_v56  ;;  %v566_v56 = vcvt.s32.f32 %v1232_v46  ;;  %v463_v57 = vmul.f32 1.442695, %v455_v55  ;;  %v477_v55 = vmul.f32 1.442695, %v462_v26  ;;  %v905_v46 = vld [vmem:[%s1823_s4 + $0x10] sm:$0xff] }
 0x1a8   : > { %v537_v2 = vmul.f32 1.442695, %v524_v58  ;;  %v539_v3 = vmul.f32 1.442695, %v525_v61  ;;  %v467_v61 = vmul.f32 1.442695, %v457_v1  ;;  %1315 = vmatprep.subr.mxu1 %v905_v46 }
 0x1a9   : > { %v517_v12 = vpop.permute.xlu1 %516  ;;  %1316 = vmatpush3.msra.mxu1 %v905_v46 }
 0x1aa   : > { %1375 = vpow2.f32 %v537_v2  ;;  %v526_v37 = vsub.f32 %v1549_v42, %v517_v12  ;;  %v1231_v42 = vunpack.c.2.s8 %v1334_v13  ;;  %v465_v2 = vmul.f32 1.442695, %v456_v0  ;;  %v580_v13 = vld [vmem:[#allocation3 + $0x28] sm:$0xff] }
 0x1ab   : > { %v1366_v14 = vpop.eup %1365  ;;  %1377 = vpow2.f32 %v539_v3 }
 0x1ac   : > { %v541_v18 = vmul.f32 1.442695, %v526_v37  ;;  %v567_v22 = vmul.f32 %v1366_v14, %v559_v4  ;;  %v565_v49 = vcvt.s32.f32 %v1231_v42  ;;  %v579_v4 = vld [vmem:[#allocation3 + $0x20] sm:$0xff] }
 0x1ae   : > { %1379 = vpow2.f32 %v541_v18  ;;  %591 = vadd.xlane.f32.xlu0 %v567_v22  ;;  %1301 = vmatprep.mubr.f32.mxu0 %v567_v22  ;;  %v581_v22 = vld [vmem:[#allocation3 + $0x30] sm:$0xff] }
 0x1af   : > { %v1368_v41 = vpop.eup %1367  ;;  %1381 = vpow2.f32 %v463_v57 }
 0x1b0   : > { %v1370_v30 = vpop.eup %1369  ;;  %v569_v31 = vmul.f32 %v1368_v41, %v561_v23  ;;  %1383 = vpow2.f32 %v467_v61 }
 0x1b1   : > { %v568_v35 = vmul.f32 %v1370_v30, %v560_v40  ;;  %1385 = vpow2.f32 %v465_v2  ;;  %v582_v30 = vld [vmem:[#allocation3 + $0x38] sm:$0xff] }
 0x1b2   : > { %595 = vadd.xlane.f32.xlu0 %v569_v31  ;;  %1387 = vpow2.f32 %v469_v48 }
 0x1b3   : > { %v1372_v38 = vpop.eup %1371  ;;  %593 = vadd.xlane.f32.xlu1 %v568_v35  ;;  %1302 = vmatmul.mubr.f32.vlgmr.msra.gmra.mxu0 %v568_v35  ;;  %1389 = vpow2.f32 %v471_v51 }
 0x1b4   : > { %v1374_v39 = vpop.eup %1373  ;;  %1304 = vmatprep.mubr.f32.mxu0 %v569_v31  ;;  %v570_v44 = vmul.f32 %v1372_v38, %v562_v32  ;;  %1391 = vpow2.f32 %v473_v53 }
 0x1b5   : > { %v571_v47 = vmul.f32 %v1374_v39, %v563_v36  ;;  %1393 = vpow2.f32 %v475_v43 }
 0x1b6   : > { %597 = vadd.xlane.f32.xlu0 %v570_v44  ;;  %1395 = vpow2.f32 %v477_v55 }
 0x1b7   : > { %v1376_v21 = vpop.eup %1375  ;;  %599 = vadd.xlane.f32.xlu1 %v571_v47  ;;  %1305 = vmatmul.mubr.f32.gmra.mxu0 %v570_v44 }
 0x1b8   : > { %v1378_v50 = vpop.eup %1377  ;;  %1307 = vmatprep.mubr.f32.mxu0 %v571_v47  ;;  %v572_v52 = vmul.f32 %v1376_v21, %v564_v45  ;;  %v904_v47 = vld [vmem:[%s1823_s4 + $0x8] sm:$0xff] }
 0x1b9   : > { %v573_v28 = vmul.f32 %v1378_v50, %v565_v49  ;;  %1317 = vmatprep.subr.mxu1 %v904_v47 }
 0x1ba   : > { %601 = vadd.xlane.f32.xlu0 %v572_v52  ;;  %1318 = vmatpush3.msra.mxu1 %v904_v47 }
 0x1bb   : > { %v1380_v29 = vpop.eup %1379  ;;  %603 = vadd.xlane.f32.xlu1 %v573_v28  ;;  %1308 = vmatmul.mubr.f32.gmra.mxu0 %v572_v52  ;;  %v903_v52 = vld [vmem:[%s1823_s4] sm:$0xff] }
 0x1bc   : > { %1310 = vmatprep.mubr.f32.mxu0 %v573_v28  ;;  %v574_v58 = vmul.f32 %v1380_v29, %v566_v56  ;;  %v1382_v54 = vpop.eup %1381  ;;  %1319 = vmatprep.subr.mxu1 %v903_v52 }
 0x1bd   : > { %v1384_v59 = vpop.eup %1383  ;;  %v583_v9 = vmul.f32 %v1382_v54, %v575_v8  ;;  %1320 = vmatpush3.msra.mxu1 %v903_v52 }
 0x1be   : > { %605 = vadd.xlane.f32.xlu0 %v574_v58  ;;  %v1386_v60 = vpop.eup %1385  ;;  %v585_v17 = vmul.f32 %v1384_v59, %v577_v11 }
 0x1bf   : > { %1311 = vmatmul.mubr.f32.gmra.mxu0 %v574_v58  ;;  %v1388_v62 = vpop.eup %1387  ;;  %v584_v19 = vmul.f32 %v1386_v60, %v576_v16 }
 0x1c0   : > { %v1390_v63 = vpop.eup %1389  ;;  %v586_v12 = vmul.f32 %v1388_v62, %v578_v24  ;;  %v646_v24 = vld [vmem:[#allocation4 + $0x20] sm:$0xff] }
 0x1c1   : > { %v1392_v0 = vpop.eup %1391  ;;  %v587_v33 = vmul.f32 %v1390_v63, %v579_v4 }
 0x1c2   : > { %v1394_v1 = vpop.eup %1393  ;;  %v588_v40 = vmul.f32 %v1392_v0, %v580_v13 }
 0x1c3   : > { %v1396_v5 = vpop.eup %1395  ;;  %v589_v27 = vmul.f32 %v1394_v1, %v581_v22 }
 0x1c4   : > { %v590_v36 = vmul.f32 %v1396_v5, %v582_v30 }
 0x1cc   : > { %652 = vperm.xlu1 %1364, %v1382_v54   ;;  %v643_v54 = vld [vmem:[#allocation4 + $0x8] sm:$0xff] }
 0x1d0   : > { %662 = vperm.xlu1 %1364, %v1384_v59   ;;  %v642_v59 = vld [vmem:[#allocation4] sm:$0xff] }
 0x1d4   : > { %667 = vperm.xlu1 %1364, %v1388_v62   ;;  %657 = vperm.xlu0 %1363, %v1386_v60  }
 0x1d8   : > { %677 = vperm.xlu1 %1364, %v1392_v0   ;;  %672 = vperm.xlu0 %1363, %v1390_v63   ;;  %v645_v63 = vld [vmem:[#allocation4 + $0x18] sm:$0xff] }
 0x1dc   : > { %682 = vperm.xlu0 %1363, %v1394_v1  }
 0x1e0   : > { %687 = vperm.xlu0 %1363, %v1396_v5  }
 0x237   : > { %v592_v10 = vpop.xlane.xlu0 %591 }
 0x238   : > { %v607_v15 = vadd.f32 %v592_v10, %v583_v9 }
 0x23a   : > { %616 = vst.msk [vmem:[#allocation3] sm:$0xff] %vm318_vm0, %v607_v15  ;;  %v647_v15 = vld [vmem:[#allocation4 + $0x28] sm:$0xff] }
 0x23b   : > { %v596_v20 = vpop.xlane.xlu0 %595 }
 0x23c   : > { %v594_v26 = vpop.xlane.xlu1 %593  ;;  %v609_v3 = vadd.f32 %v596_v20, %v585_v17 }
 0x23d   : > { %v608_v7 = vadd.f32 %v594_v26, %v584_v19 }
 0x23e   : > { %618 = vst.msk [vmem:[#allocation3 + $0x10] sm:$0xff] %vm318_vm0, %v609_v3 }
 0x23f   : > { %617 = vst.msk [vmem:[#allocation3 + $0x8] sm:$0xff] %vm318_vm0, %v608_v7  ;;  %v598_v37 = vpop.xlane.xlu0 %597  ;;  %v649_v7 = vld [vmem:[#allocation4 + $0x38] sm:$0xff] }
 0x240   : > { %v600_v14 = vpop.xlane.xlu1 %599  ;;  %v610_v18 = vadd.f32 %v598_v37, %v586_v12 }
 0x241   : > { %v611_v23 = vadd.f32 %v600_v14, %v587_v33  ;;  %v839_v25 = vld [vmem:[#allocation3] sm:$0xff]  ;;  %v648_v14 = vld [vmem:[#allocation4 + $0x30] sm:$0xff] }
 0x242   : > { %619 = vst.msk [vmem:[#allocation3 + $0x18] sm:$0xff] %vm318_vm0, %v610_v18  ;;  %1397 = vrcp.f32 %v839_v25 }
 0x243   : > { %620 = vst.msk [vmem:[#allocation3 + $0x20] sm:$0xff] %vm318_vm0, %v611_v23  ;;  %v602_v41 = vpop.xlane.xlu0 %601 }
 0x244   : > { %v604_v31 = vpop.xlane.xlu1 %603  ;;  %v612_v32 = vadd.f32 %v602_v41, %v588_v40 }
 0x245   : > { %v613_v34 = vadd.f32 %v604_v31, %v589_v27  ;;  %v841_v35 = vld [vmem:[#allocation3 + $0x10] sm:$0xff] }
 0x246   : > { %621 = vst.msk [vmem:[#allocation3 + $0x28] sm:$0xff] %vm318_vm0, %v612_v32  ;;  %v840_v42 = vld [vmem:[#allocation3 + $0x8] sm:$0xff]  ;;  %1399 = vrcp.f32 %v841_v35 }
 0x247   : > { %622 = vst.msk [vmem:[#allocation3 + $0x30] sm:$0xff] %vm318_vm0, %v613_v34  ;;  %v606_v38 = vpop.xlane.xlu0 %605  ;;  %1401 = vrcp.f32 %v840_v42 }
 0x248   : > { %v614_v39 = vadd.f32 %v606_v38, %v590_v36  ;;  %v653_v51 = vpop.permute.xlu1 %652 }
 0x249   : > { %v842_v44 = vld [vmem:[#allocation3 + $0x18] sm:$0xff]  ;;  %v690_v1 = vmul.f32 %v653_v51, %v642_v59  ;;  %v1198_v51 = vld [vmem:[%s1824_s5] ss:$0 sm:$0xff] }
 0x24a   : > { %623 = vst.msk [vmem:[#allocation3 + $0x38] sm:$0xff] %vm318_vm0, %v614_v39  ;;  %v843_v45 = vld [vmem:[#allocation3 + $0x20] sm:$0xff]  ;;  %1403 = vrcp.f32 %v842_v44 }
 0x24b   : > { %1405 = vrcp.f32 %v843_v45 }
 0x24c   : > { %v663_v43 = vpop.permute.xlu1 %662 }
 0x24d   : > { %v844_v49 = vld [vmem:[#allocation3 + $0x28] sm:$0xff]  ;;  %v692_v19 = vmul.f32 %v663_v43, %v644_v6 }
 0x24e   : > { %v845_v21 = vld [vmem:[#allocation3 + $0x30] sm:$0xff]  ;;  %1407 = vrcp.f32 %v844_v49 }
 0x24f   : > { %v1398_v50 = vpop.eup %1397  ;;  %1409 = vrcp.f32 %v845_v21  ;;  %v658_v53 = vpop.permute.xlu0 %657 }
 0x250   : > { %857 = vperm.xlu1 %1364, %v1398_v50   ;;  %v668_v60 = vpop.permute.xlu1 %667  ;;  %v691_v62 = vmul.f32 %v658_v53, %v643_v54 }
 0x251   : > { %v846_v56 = vld [vmem:[#allocation3 + $0x38] sm:$0xff]  ;;  %v693_v10 = vmul.f32 %v668_v60, %v645_v63 }
 0x252   : > { %1411 = vrcp.f32 %v846_v56 }
 0x253   : > { %v1400_v28 = vpop.eup %1399  ;;  %v673_v55 = vpop.permute.xlu0 %672 }
 0x254   : > { %v1402_v57 = vpop.eup %1401  ;;  %867 = vperm.xlu0 %1363, %v1400_v28   ;;  %v678_v16 = vpop.permute.xlu1 %677  ;;  %v694_v37 = vmul.f32 %v673_v55, %v646_v24 }
 0x255   : > { %862 = vperm.xlu1 %1364, %v1402_v57   ;;  %v695_v3 = vmul.f32 %v678_v16, %v647_v15 }
 0x257   : > { %v1404_v29 = vpop.eup %1403  ;;  %v683_v8 = vpop.permute.xlu0 %682 }
 0x258   : > { %v1406_v58 = vpop.eup %1405  ;;  %v696_v40 = vmul.f32 %v683_v8, %v648_v14 }
 0x259   : > { %877 = vperm.xlu0 %1363, %v1406_v58   ;;  %872 = vperm.xlu1 %1364, %v1404_v29  }
 0x25b   : > { %v1408_v61 = vpop.eup %1407  ;;  %v688_v12 = vpop.permute.xlu0 %687 }
 0x25c   : > { %v1410_v2 = vpop.eup %1409  ;;  %v697_v22 = vmul.f32 %v688_v12, %v649_v7 }
 0x25d   : > { %887 = vperm.xlu0 %1363, %v1410_v2   ;;  %882 = vperm.xlu1 %1364, %v1408_v61  }
 0x25f   : > { %v1412_v48 = vpop.eup %1411 }
 0x261   : > { %892 = vperm.xlu1 %1364, %v1412_v48  }
 0x273   : > { %v1303_v0 = vpop.f32.mrf.mxu0 }
 0x274   : > { %v804_v5 = vadd.f32 %v1303_v0, %v691_v62 }
 0x275   : > { %v764_v9 = vpop.f32.mrf.mxu0 }
 0x276   : > { %813 = vst.msk [vmem:[#allocation4 + $0x8] sm:$0xff] %vm335_vm1, %v804_v5  ;;  %v803_v11 = vadd.f32 %v764_v9, %v690_v1 }
 0x277   : > { %v1306_v17 = vpop.f32.mrf.mxu0 }
 0x278   : > { %812 = vst.msk [vmem:[#allocation4] sm:$0xff] %vm335_vm1, %v803_v11  ;;  %v806_v20 = vadd.f32 %v1306_v17, %v693_v10 }
 0x279   : > { %v774_v26 = vpop.f32.mrf.mxu0 }
 0x27a   : > { %815 = vst.msk [vmem:[#allocation4 + $0x18] sm:$0xff] %vm335_vm1, %v806_v20  ;;  %v805_v4 = vadd.f32 %v774_v26, %v692_v19 }
 0x27b   : > { %v1309_v33 = vpop.f32.mrf.mxu0 }
 0x27c   : > { %814 = vst.msk [vmem:[#allocation4 + $0x10] sm:$0xff] %vm335_vm1, %v805_v4  ;;  %v808_v13 = vadd.f32 %v1309_v33, %v695_v3 }
 0x27d   : > { %v784_v18 = vpop.f32.mrf.mxu0  ;;  %v832_v38 = vld [vmem:[#allocation4 + $0x8] sm:$0xff] }
 0x27e   : > { %817 = vst.msk [vmem:[#allocation4 + $0x28] sm:$0xff] %vm335_vm1, %v808_v13  ;;  %v807_v23 = vadd.f32 %v784_v18, %v694_v37 }
 0x27f   : > { %v1312_v25 = vpop.f32.mrf.mxu0  ;;  %v831_v32 = vld [vmem:[#allocation4] sm:$0xff] }
 0x280   : > { %816 = vst.msk [vmem:[#allocation4 + $0x20] sm:$0xff] %vm335_vm1, %v807_v23  ;;  %v810_v27 = vadd.f32 %v1312_v25, %v697_v22 }
 0x281   : > { %v794_v41 = vpop.f32.mrf.mxu0  ;;  %v834_v46 = vld [vmem:[#allocation4 + $0x18] sm:$0xff] }
 0x282   : > { %819 = vst.msk [vmem:[#allocation4 + $0x38] sm:$0xff] %vm335_vm1, %v810_v27  ;;  %v809_v30 = vadd.f32 %v794_v41, %v696_v40 }
 0x283   : > { %v833_v36 = vld [vmem:[#allocation4 + $0x10] sm:$0xff] }
 0x284   : > { %818 = vst.msk [vmem:[#allocation4 + $0x30] sm:$0xff] %vm335_vm1, %v809_v30 }
 0x285   : > { %v836_v56 = vld [vmem:[#allocation4 + $0x28] sm:$0xff] }
 0x287   : > { %v835_v49 = vld [vmem:[#allocation4 + $0x20] sm:$0xff] }
 0x289   : > { %v838_v2 = vld [vmem:[#allocation4 + $0x38] sm:$0xff] }
 0x28b   : > { %v837_v57 = vld [vmem:[#allocation4 + $0x30] sm:$0xff] }
 0x2cb   : > { %v858_v31 = vpop.permute.xlu1 %857 }
 0x2cc   : > { %v895_v34 = vmul.f32 %v858_v31, %v831_v32 }
 0x2ce   : > { %1321 = vmatprep.mubr.msk.f32.mxu1 %vm335_vm1, %v895_v34 }
 0x2cf   : > { %v868_v35 = vpop.permute.xlu0 %867 }
 0x2d0   : > { %v863_v42 = vpop.permute.xlu1 %862  ;;  %v897_v39 = vmul.f32 %v868_v35, %v833_v36 }
 0x2d1   : > { %v896_v44 = vmul.f32 %v863_v42, %v832_v38 }
 0x2d3   : > { %1322 = vmatmul.mubr.msk.f32.vlgmr.msra.gmra.mxu1 %vm335_vm1, %v896_v44 }
 0x2d4   : > { %v873_v45 = vpop.permute.xlu1 %872  ;;  %v878_v47 = vpop.permute.xlu0 %877  ;;  %1324 = vmatprep.mubr.msk.f32.mxu1 %vm335_vm1, %v897_v39 }
 0x2d5   : > { %v898_v21 = vmul.f32 %v873_v45, %v834_v46  ;;  %v899_v50 = vmul.f32 %v878_v47, %v835_v49 }
 0x2d7   : > { %1325 = vmatmul.mubr.msk.f32.gmra.mxu1 %vm335_vm1, %v898_v21 }
 0x2d8   : > { %v883_v52 = vpop.permute.xlu1 %882  ;;  %v888_v28 = vpop.permute.xlu0 %887  ;;  %1327 = vmatprep.mubr.msk.f32.mxu1 %vm335_vm1, %v899_v50 }
 0x2d9   : > { %v900_v29 = vmul.f32 %v883_v52, %v836_v56  ;;  %v901_v58 = vmul.f32 %v888_v28, %v837_v57 }
 0x2db   : > { %1328 = vmatmul.mubr.msk.f32.gmra.mxu1 %vm335_vm1, %v900_v29 }
 0x2dc   : > { %v893_v61 = vpop.permute.xlu1 %892  ;;  %1330 = vmatprep.mubr.msk.f32.mxu1 %vm335_vm1, %v901_v58 }
 0x2dd   : > { %v902_v48 = vmul.f32 %v893_v61, %v838_v2 }
 0x2df   : > { %1331 = vmatmul.mubr.msk.f32.gmra.mxu1 %vm335_vm1, %v902_v48 }
 0x393   : > { %v1323_v53 = vpop.f32.mrf.mxu1 }
 0x394   : > { %v1010_v43 = vadd.f32 %v1323_v53, %v1198_v51 }
 0x395   : > { %v1004_v54 = vpop.f32.mrf.mxu1 }
 0x396   : > { %v1053_v55 = vmul.f32 1.442695, %v1010_v43  ;;  %v1005_v59 = vadd.f32 %v1198_v51, %v1004_v54  ;;  %vm1044_vm2 = vcmp.gt.f32.partialorder %v1010_v43, 0.0 }
 0x397   : > { %v1326_v60 = vpop.f32.mrf.mxu1 }
 0x398   : > { %1413 = vpow2.f32 %v1053_v55  ;;  %v1051_v62 = vmul.f32 1.442695, %v1005_v59  ;;  %v1020_v63 = vadd.f32 %v1326_v60, %v1198_v51  ;;  %vm1043_vm3 = vcmp.gt.f32.partialorder %v1005_v59, 0.0 }
 0x399   : > { %v1014_v0 = vpop.f32.mrf.mxu1 }
 0x39a   : > { %1415 = vpow2.f32 %v1051_v62  ;;  %v1057_v1 = vmul.f32 1.442695, %v1020_v63  ;;  %v1015_v5 = vadd.f32 %v1198_v51, %v1014_v0  ;;  %vm1046_vm4 = vcmp.gt.f32.partialorder %v1020_v63, 0.0 }
 0x39b   : > { %v1329_v6 = vpop.f32.mrf.mxu1 }
 0x39c   : > { %1417 = vpow2.f32 %v1057_v1  ;;  %v1055_v8 = vmul.f32 1.442695, %v1015_v5  ;;  %v1030_v9 = vadd.f32 %v1329_v6, %v1198_v51  ;;  %vm1045_vm5 = vcmp.gt.f32.partialorder %v1015_v5, 0.0 }
 0x39d   : > { %v1024_v10 = vpop.f32.mrf.mxu1 }
 0x39e   : > { %1419 = vpow2.f32 %v1055_v8  ;;  %v1061_v11 = vmul.f32 1.442695, %v1030_v9  ;;  %v1025_v15 = vadd.f32 %v1198_v51, %v1024_v10  ;;  %vm1048_vm6 = vcmp.gt.f32.partialorder %v1030_v9, 0.0 }
 0x39f   : > { %v1332_v16 = vpop.f32.mrf.mxu1 }
 0x3a0   : > { %1421 = vpow2.f32 %v1061_v11  ;;  %v1059_v17 = vmul.f32 1.442695, %v1025_v15  ;;  %v1040_v19 = vadd.f32 %v1332_v16, %v1198_v51  ;;  %vm1047_vm7 = vcmp.gt.f32.partialorder %v1025_v15, 0.0 }
 0x3a1   : > { %v1034_v20 = vpop.f32.mrf.mxu1 }
 0x3a2   : > { %1423 = vpow2.f32 %v1059_v17  ;;  %v1065_v24 = vmul.f32 1.442695, %v1040_v19  ;;  %v1035_v26 = vadd.f32 %v1198_v51, %v1034_v20  ;;  %vm1050_vm8 = vcmp.gt.f32.partialorder %v1040_v19, 0.0 }
 0x3a4   : > { %1425 = vpow2.f32 %v1065_v24  ;;  %v1063_v3 = vmul.f32 1.442695, %v1035_v26  ;;  %vm1049_vm9 = vcmp.gt.f32.partialorder %v1035_v26, 0.0 }
 0x3a5   : > { %v1414_v4 = vpop.eup %1413 }
 0x3a6   : > { %v1208_v7 = vadd.f32 -1.0, %v1414_v4  ;;  %1427 = vpow2.f32 %v1063_v3 }
 0x3a7   : > { %v1416_v12 = vpop.eup %1415 }
 0x3a8   : > { %v1076_v33 = vsel %vm1044_vm2, %v1010_v43, %v1208_v7  ;;  %v1207_v37 = vadd.f32 -1.0, %v1416_v12 }
 0x3a9   : > { %v1418_v13 = vpop.eup %1417  ;;  %1084 = vst.msk [vmem:[%s1792_s18 + $0x8] sm:$0xff] %vm335_vm1, %v1076_v33 }
 0x3aa   : > { %v1075_v14 = vsel %vm1043_vm3, %v1005_v59, %v1207_v37  ;;  %v1210_v18 = vadd.f32 -1.0, %v1418_v13 }
 0x3ab   : > { %v1420_v22 = vpop.eup %1419  ;;  %1083 = vst.msk [vmem:[%s1792_s18] sm:$0xff] %vm335_vm1, %v1075_v14 }
 0x3ac   : > { %v1078_v23 = vsel %vm1046_vm4, %v1020_v63, %v1210_v18  ;;  %v1209_v25 = vadd.f32 -1.0, %v1420_v22 }
 0x3ad   : > { %v1422_v40 = vpop.eup %1421  ;;  %1086 = vst.msk [vmem:[%s1792_s18 + $0x18] sm:$0xff] %vm335_vm1, %v1078_v23 }
 0x3ae   : > { %v1077_v27 = vsel %vm1045_vm5, %v1015_v5, %v1209_v25  ;;  %v1212_v41 = vadd.f32 -1.0, %v1422_v40 }
 0x3af   : > { %v1424_v30 = vpop.eup %1423  ;;  %1085 = vst.msk [vmem:[%s1792_s18 + $0x10] sm:$0xff] %vm335_vm1, %v1077_v27 }
 0x3b0   : > { %v1080_v31 = vsel %vm1048_vm6, %v1030_v9, %v1212_v41  ;;  %v1211_v32 = vadd.f32 -1.0, %v1424_v30 }
 0x3b1   : > { %v1426_v34 = vpop.eup %1425  ;;  %1088 = vst.msk [vmem:[%s1792_s18 + $0x28] sm:$0xff] %vm335_vm1, %v1080_v31 }
 0x3b2   : > { %v1079_v35 = vsel %vm1047_vm7, %v1025_v15, %v1211_v32  ;;  %v1214_v36 = vadd.f32 -1.0, %v1426_v34 }
 0x3b3   : > { %v1428_v42 = vpop.eup %1427  ;;  %1087 = vst.msk [vmem:[%s1792_s18 + $0x20] sm:$0xff] %vm335_vm1, %v1079_v35 }
 0x3b4   : > { %v1082_v38 = vsel %vm1050_vm8, %v1040_v19, %v1214_v36  ;;  %v1213_v39 = vadd.f32 -1.0, %v1428_v42 }
 0x3b5   : > { %1090 = vst.msk [vmem:[%s1792_s18 + $0x38] sm:$0xff] %vm335_vm1, %v1082_v38 }
 0x3b6   : > { %v1081_v44 = vsel %vm1049_vm9, %v1035_v26, %v1213_v39 }
 0x3b7   : > { %1089 = vst.msk [vmem:[%s1792_s18 + $0x30] sm:$0xff] %vm335_vm1, %v1081_v44 }
 0x3b8 PF: > { %s16_s23 = sadd.s32 1, %s1451_s23   ;;  %s1826_s21 = smov %s1447_s22 }
 0x3b9   : > { %p13_p5 = scmp.ge.s32.totalorder %s16_s23, 4   ;;  %s1827_s22 = smov %s1829_s24 }
 0x3bb   :  { %15 = sbr.rel (!%p13_p5) target bundleno = 2 (0x2), region = 89 }

</bundles_post_ra>
